<compile_context>
chip_gen: v5e
topology: v5e:2x2
jax: 0.10.0
libtpu: 0.0.40
codegen_flags: <defaults>
</compile_context>

<pallas_src>
import functools

import jax
import jax.numpy as jnp
from jax import lax
from jax.experimental import pallas as pl
from jax.experimental.pallas import tpu as pltpu

BN_EPS = 1e-5
_HI = jax.lax.Precision.HIGHEST


# ---------------------------------------------------------------------------
# Kernel: both separable-conv branches (gcl + gcr) for a block of images in a
# single MXU dot, plus fused per-block BatchNorm partial statistics.
# ---------------------------------------------------------------------------
def _gc_conv_stats_kernel(xp_ref, m_ref, out_ref, stats_ref,
                          *, k, d, H, Hp, WCo, nimg):
    # xp_ref   : (1, nimg*Hp, W*Ci) bf16, per-image H-padded, (w,ci) on lanes
    # m_ref    : (W*Ci, k*W*Co)     bf16, merged banded weights (one W*Co
    #                               column block per H-tap, both branches)
    # out_ref  : (1, nimg*H, W*Co)  bf16, gcl(x)+gcr(x), (w,co) on lanes
    # stats_ref: (1, 2, W*Co)       f32, row 0 = sum, row 1 = sum of squares
    xp = xp_ref[0]                                              # (nimg*Hp, WCi)

    # Single MXU contraction for the whole block (both branches, both stages,
    # all images of the block folded into the M dimension).
    z = jnp.dot(xp, m_ref[...], preferred_element_type=jnp.float32)

    # Row-shifted accumulation over the k H-taps, per image (the per-image H
    # padding keeps the taps inside each image's own row range; lane slices
    # are 128-aligned).
    accs = []
    for i in range(nimg):
        base = i * Hp
        acc = z[base:base + H, 0:WCo]
        for t in range(1, k):
            acc = acc + z[base + t * d:base + t * d + H, t * WCo:(t + 1) * WCo]
        accs.append(acc)
    y = accs[0] if nimg == 1 else jnp.concatenate(accs, axis=0)  # (nimg*H, WCo) f32

    out_ref[0] = y.astype(out_ref.dtype)                         # bf16 inter-pass
    # Fused BatchNorm partial statistics from the f32 accumulator (reduced
    # over rows here; N-block and W reductions are a few hundred floats of
    # XLA work in the wrapper).
    stats_ref[0] = jnp.concatenate(
        [jnp.sum(y, axis=0, keepdims=True),
         jnp.sum(y * y, axis=0, keepdims=True)], axis=0)


# ---------------------------------------------------------------------------
# Wrapper-side weight folding (built ONCE per parameter set, outside the
# jitted forward — review item).
#
# With x flattened to (H, W*Ci) and padded along H, the module's output is
#     gcl(x) + gcr(x) = sum_t RowShift_{t*d}( x_pad @ M_t )
# where M_t = E_t @ BL2 + BR1 @ D_t  (all (W*Ci, W*Co) / (W*Co, W*Co)):
#   E_t  = I_W (x) wl1[t]   per-tap channel map of gcl's (k,1) conv
#   BL2  = banded operator of gcl's (1,k) conv (W boundary in the band)
#   BR1  = banded operator of gcr's (1,k) conv
#   D_t  = I_W (x) wr2[t]   per-tap channel map of gcr's (k,1) conv
# ---------------------------------------------------------------------------
def prepare_folded_weights(params, W, *, k=7, d=1):
    wl1, wl2 = params["wl1_taps"], params["wl2_taps"]   # (k,Ci,Co), (k,Co,Co)
    wr1, wr2 = params["wr1_taps"], params["wr2_taps"]   # (k,Ci,Co), (k,Co,Co)
    p = d * (k // 2)
    eye_w = jnp.eye(W, dtype=jnp.float32)
    bl2 = sum(jnp.kron(jnp.eye(W, W, k=p - t * d, dtype=jnp.float32), wl2[t])
              for t in range(k))                        # (W*Co, W*Co)
    br1 = sum(jnp.kron(jnp.eye(W, W, k=p - t * d, dtype=jnp.float32), wr1[t])
              for t in range(k))                        # (W*Ci, W*Co)
    mats = []
    for t in range(k):
        e_t = jnp.kron(eye_w, wl1[t])                   # (W*Ci, W*Co)
        d_t = jnp.kron(eye_w, wr2[t])                   # (W*Co, W*Co)
        mats.append(jnp.dot(e_t, bl2, precision=_HI) +
                    jnp.dot(br1, d_t, precision=_HI))
    return jnp.concatenate(mats, axis=1).astype(jnp.bfloat16)   # (W*Ci, k*W*Co)


# ---------------------------------------------------------------------------
# Forward wrapper.  `m_cat` comes from prepare_folded_weights (cached per
# parameter set).  num_batch_blocks=1 -> single grid step (v5e/v6e default);
# set to 2 on v7x once per-step compute dominates step overhead.
# ---------------------------------------------------------------------------
def global_conv_forward(x_nchw, m_cat, gamma, beta, *, k=7, d=1,
                        num_batch_blocks=1):
    N, Ci, H, W = x_nchw.shape
    Co = gamma.shape[0]
    p = d * (k // 2)
    Hp = H + 2 * p
    WCi, WCo = W * Ci, W * Co

    nb = num_batch_blocks
    assert N % nb == 0, "num_batch_blocks must divide the batch"
    nimg = N // nb

    # NHWC, fold (w, ci) into lanes, pad H only (tiny bf16 tensor); the W
    # boundary is handled inside the folded weights, never materialised.
    x_f = jnp.transpose(x_nchw, (0, 2, 3, 1)).astype(jnp.bfloat16)
    x_f = x_f.reshape(N, H, WCi)
    xp_f = jnp.pad(x_f, ((0, 0), (p, p), (0, 0)))        # (N, Hp, W*Ci)
    xp_f = xp_f.reshape(nb, nimg * Hp, WCi)              # batch folded into M

    conv_y, stats = pl.pallas_call(
        functools.partial(_gc_conv_stats_kernel,
                          k=k, d=d, H=H, Hp=Hp, WCo=WCo, nimg=nimg),
        out_shape=(jax.ShapeDtypeStruct((nb, nimg * H, WCo), jnp.bfloat16),
                   jax.ShapeDtypeStruct((nb, 2, WCo), jnp.float32)),
        grid=(nb,),
        in_specs=[pl.BlockSpec((1, nimg * Hp, WCi), lambda b: (b, 0, 0)),
                  # Constant index_map -> fetched once; single-buffered so it
                  # does not double its VMEM footprint (v7x: 64 MiB VMEM).
                  pl.BlockSpec((WCi, k * WCo), lambda b: (0, 0),
                               pipeline_mode=pl.Buffered(1))],
        out_specs=(pl.BlockSpec((1, nimg * H, WCo), lambda b: (b, 0, 0)),
                   pl.BlockSpec((1, 2, WCo), lambda b: (b, 0, 0))),
        compiler_params=pltpu.CompilerParams(
            dimension_semantics=("parallel",),
            vmem_limit_bytes=32 * 1024 * 1024),   # keep <= ~48 MiB for v7x
    )(xp_f, m_cat)

    # BatchNorm2d (training-mode default): batch statistics over (N, H, W),
    # assembled from the kernel's per-block partials (a few hundred floats).
    cnt = float(N * H * W)
    tot = jnp.sum(stats[:, 0, :], axis=0).reshape(W, Co).sum(axis=0)   # (Co,)
    tot2 = jnp.sum(stats[:, 1, :], axis=0).reshape(W, Co).sum(axis=0)  # (Co,)
    mean = tot / cnt
    var = jnp.maximum(tot2 / cnt - mean * mean, 0.0)    # biased var (PyTorch BN)
    inv = lax.rsqrt(var + BN_EPS)
    scale_c = gamma * inv                               # (Co,)
    shift_c = beta - mean * scale_c                     # (Co,)

    # BN + ReLU left to XLA so it fuses with the NHWC->NCHW transpose
    # (review item: the standalone elementwise Pallas pass cost a launch plus
    # an extra full HBM read+write of y).
    y = conv_y.reshape(N, H, W, Co).astype(jnp.float32)
    out = jnp.maximum(y * scale_c + shift_c, 0.0)
    return jnp.transpose(out, (0, 3, 1, 2))             # NCHW for the module API


# ---------------------------------------------------------------------------
# Deterministic parameter init (mirrors the module's __init__ shapes).
# ---------------------------------------------------------------------------
def init_params(key, chi, cho, k=7):
    ks = jax.random.split(key, 4)
    # PyTorch OIHW conv weights; all convs have bias=False in the module.
    wl1_oihw = 0.1 * jax.random.normal(ks[0], (cho, chi, k, 1), jnp.float32)
    wl2_oihw = 0.1 * jax.random.normal(ks[1], (cho, cho, 1, k), jnp.float32)
    wr1_oihw = 0.1 * jax.random.normal(ks[2], (cho, chi, 1, k), jnp.float32)
    wr2_oihw = 0.1 * jax.random.normal(ks[3], (cho, cho, k, 1), jnp.float32)
    return dict(
        wl1_oihw=wl1_oihw, wl2_oihw=wl2_oihw,
        wr1_oihw=wr1_oihw, wr2_oihw=wr2_oihw,
        # per-tap (kernel-position) matrices, shape (k, Cin, Cout):
        wl1_taps=jnp.transpose(wl1_oihw[:, :, :, 0], (2, 1, 0)),
        wl2_taps=jnp.transpose(wl2_oihw[:, :, 0, :], (2, 1, 0)),
        wr1_taps=jnp.transpose(wr1_oihw[:, :, 0, :], (2, 1, 0)),
        wr2_taps=jnp.transpose(wr2_oihw[:, :, :, 0], (2, 1, 0)),
        gamma=jnp.ones((cho,), jnp.float32),   # BatchNorm2d default init
        beta=jnp.zeros((cho,), jnp.float32),
    )


# ---------------------------------------------------------------------------
# Pure-JAX reference (for sanity checking the kernel path).
# ---------------------------------------------------------------------------
def _conv2d_ref(x_nhwc, w_oihw, pad, dil):
    w_hwio = jnp.transpose(w_oihw, (2, 3, 1, 0))
    return lax.conv_general_dilated(
        x_nhwc, w_hwio, window_strides=(1, 1), padding=pad,
        rhs_dilation=dil, dimension_numbers=("NHWC", "HWIO", "NHWC"),
        precision=_HI)


def global_conv_ref(x_nchw, prm, *, k=7, d=1):
    p = d * (k // 2)
    x = jnp.transpose(x_nchw, (0, 2, 3, 1)).astype(jnp.float32)
    gcl = _conv2d_ref(
        _conv2d_ref(x, prm["wl1_oihw"], [(p, p), (0, 0)], (d, d)),
        prm["wl2_oihw"], [(0, 0), (p, p)], (d, d))
    gcr = _conv2d_ref(
        _conv2d_ref(x, prm["wr1_oihw"], [(0, 0), (p, p)], (d, d)),
        prm["wr2_oihw"], [(p, p), (0, 0)], (d, d))
    y = gcl + gcr
    mean = jnp.mean(y, axis=(0, 1, 2))
    var = jnp.mean((y - mean) ** 2, axis=(0, 1, 2))
    yhat = (y - mean) * jax.lax.rsqrt(var + BN_EPS)
    out = jnp.maximum(yhat * prm["gamma"] + prm["beta"], 0.0)
    return jnp.transpose(out, (0, 3, 1, 2))


if __name__ == "__main__":
    key = jax.random.PRNGKey(0)
    kx, kp = jax.random.split(key)
    N, Ci, Co, H, W, K, D = 2, 4, 8, 16, 16, 7, 1

    x = jax.random.normal(kx, (N, Ci, H, W), jnp.float32)
    params = init_params(kp, Ci, Co, K)

    # Folded Toeplitz weights are a function of the parameters only — built
    # once per parameter set, outside the per-forward jit (review item).
    m_cat = jax.block_until_ready(prepare_folded_weights(params, W, k=K, d=D))

    fwd = jax.jit(functools.partial(global_conv_forward, k=K, d=D))
    out = jax.block_until_ready(fwd(x, m_cat, params["gamma"], params["beta"]))
    assert out.shape == (N, Co, H, W)

    ref = global_conv_ref(x, params, k=K, d=D)
    err = float(jnp.max(jnp.abs(out - ref)))
    # bf16 MXU operands + bf16 inter-pass storage -> looser tolerance than a
    # full-f32 path; reference is full-f32.
    if not bool(jnp.allclose(out, ref, atol=5e-2, rtol=5e-2)):
        raise AssertionError(f"kernel/reference mismatch, max abs err = {err}")

    print("KERNEL_OK")
</pallas_src>

<mosaic_0001>
module attributes {stable_mosaic.version = 11 : i64} {
  func.func @_gc_conv_stats_kernel(%arg0: i32, %arg1: memref<1x44x64xbf16, #tpu.memory_space<vmem>>, %arg2: memref<64x896xbf16, #tpu.memory_space<vmem>>, %arg3: memref<1x32x128xbf16, #tpu.memory_space<vmem>>, %arg4: memref<1x2x128xf32, #tpu.memory_space<vmem>>) attributes {dimension_semantics = [#tpu.dimension_semantics<parallel>], iteration_bounds = array<i64: 1>, scalar_prefetch = 0 : i64, scratch_operands = 0 : i64, tpu.core_type = #tpu.core_type<tc>, window_params = [{transform_indices = @transform_0, window_bounds = array<i64: 1, 44, 64>}, {pipeline_mode = #tpu.pipeline_mode<synchronous>, transform_indices = @transform_1, window_bounds = array<i64: 64, 896>}, {transform_indices = @transform_2, window_bounds = array<i64: 1, 32, 128>}, {transform_indices = @transform_3, window_bounds = array<i64: 1, 2, 128>}]} {
    %c0 = arith.constant 0 : index
    %c0_0 = arith.constant 0 : index
    %c0_1 = arith.constant 0 : index
    %0 = vector.load %arg1[%c0, %c0_0, %c0_1] : memref<1x44x64xbf16, #tpu.memory_space<vmem>>, vector<1x44x64xbf16>
    %1 = vector.shape_cast %0 : vector<1x44x64xbf16> to vector<44x64xbf16>
    %c0_2 = arith.constant 0 : index
    %c0_3 = arith.constant 0 : index
    %2 = vector.load %arg2[%c0_2, %c0_3] : memref<64x896xbf16, #tpu.memory_space<vmem>>, vector<64x896xbf16>
    %cst = arith.constant dense<0.000000e+00> : vector<44x896xf32>
    %3 = tpu.matmul %1, %2, %cst {dimension_numbers = #tpu.dot_dimension_numbers<[1], [0], [0], [1], [0, 0, 1, 1], [], []>} : vector<44x64xbf16>, vector<64x896xbf16>, vector<44x896xf32> -> vector<44x896xf32>
    %4 = vector.extract_strided_slice %3 {offsets = [0, 0], sizes = [16, 128], strides = [1, 1]} : vector<44x896xf32> to vector<16x128xf32>
    %5 = vector.extract_strided_slice %3 {offsets = [1, 128], sizes = [16, 128], strides = [1, 1]} : vector<44x896xf32> to vector<16x128xf32>
    %6 = arith.addf %4, %5 : vector<16x128xf32>
    %7 = vector.extract_strided_slice %3 {offsets = [2, 256], sizes = [16, 128], strides = [1, 1]} : vector<44x896xf32> to vector<16x128xf32>
    %8 = arith.addf %6, %7 : vector<16x128xf32>
    %9 = vector.extract_strided_slice %3 {offsets = [3, 384], sizes = [16, 128], strides = [1, 1]} : vector<44x896xf32> to vector<16x128xf32>
    %10 = arith.addf %8, %9 : vector<16x128xf32>
    %11 = vector.extract_strided_slice %3 {offsets = [4, 512], sizes = [16, 128], strides = [1, 1]} : vector<44x896xf32> to vector<16x128xf32>
    %12 = arith.addf %10, %11 : vector<16x128xf32>
    %13 = vector.extract_strided_slice %3 {offsets = [5, 640], sizes = [16, 128], strides = [1, 1]} : vector<44x896xf32> to vector<16x128xf32>
    %14 = arith.addf %12, %13 : vector<16x128xf32>
    %15 = vector.extract_strided_slice %3 {offsets = [6, 768], sizes = [16, 128], strides = [1, 1]} : vector<44x896xf32> to vector<16x128xf32>
    %16 = arith.addf %14, %15 : vector<16x128xf32>
    %17 = vector.extract_strided_slice %3 {offsets = [22, 0], sizes = [16, 128], strides = [1, 1]} : vector<44x896xf32> to vector<16x128xf32>
    %18 = vector.extract_strided_slice %3 {offsets = [23, 128], sizes = [16, 128], strides = [1, 1]} : vector<44x896xf32> to vector<16x128xf32>
    %19 = arith.addf %17, %18 : vector<16x128xf32>
    %20 = vector.extract_strided_slice %3 {offsets = [24, 256], sizes = [16, 128], strides = [1, 1]} : vector<44x896xf32> to vector<16x128xf32>
    %21 = arith.addf %19, %20 : vector<16x128xf32>
    %22 = vector.extract_strided_slice %3 {offsets = [25, 384], sizes = [16, 128], strides = [1, 1]} : vector<44x896xf32> to vector<16x128xf32>
    %23 = arith.addf %21, %22 : vector<16x128xf32>
    %24 = vector.extract_strided_slice %3 {offsets = [26, 512], sizes = [16, 128], strides = [1, 1]} : vector<44x896xf32> to vector<16x128xf32>
    %25 = arith.addf %23, %24 : vector<16x128xf32>
    %26 = vector.extract_strided_slice %3 {offsets = [27, 640], sizes = [16, 128], strides = [1, 1]} : vector<44x896xf32> to vector<16x128xf32>
    %27 = arith.addf %25, %26 : vector<16x128xf32>
    %28 = vector.extract_strided_slice %3 {offsets = [28, 768], sizes = [16, 128], strides = [1, 1]} : vector<44x896xf32> to vector<16x128xf32>
    %29 = arith.addf %27, %28 : vector<16x128xf32>
    %30 = tpu.concatenate %16, %29 in 0 : vector<16x128xf32>, vector<16x128xf32> -> vector<32x128xf32>
    %31 = arith.truncf %30 : vector<32x128xf32> to vector<32x128xbf16>
    %c0_4 = arith.constant 0 : index
    %c0_5 = arith.constant 0 : index
    %c0_6 = arith.constant 0 : index
    %32 = vector.load %arg3[%c0_4, %c0_5, %c0_6] : memref<1x32x128xbf16, #tpu.memory_space<vmem>>, vector<1x32x128xbf16>
    %33 = vector.shape_cast %32 : vector<1x32x128xbf16> to vector<32x128xbf16>
    %34 = vector.shape_cast %31 : vector<32x128xbf16> to vector<1x32x128xbf16>
    tpu.vector_store %arg3[%c0_4, %c0_5, %c0_6], %34 {strides = array<i32>} : memref<1x32x128xbf16, #tpu.memory_space<vmem>>, vector<1x32x128xbf16>,
    %cst_7 = arith.constant dense<0.000000e+00> : vector<128xf32>
    %35 = vector.multi_reduction <add>, %30, %cst_7 [0] : vector<32x128xf32> to vector<128xf32>
    %36 = vector.shape_cast %35 : vector<128xf32> to vector<1x128xf32>
    %37 = arith.mulf %30, %30 : vector<32x128xf32>
    %cst_8 = arith.constant dense<0.000000e+00> : vector<128xf32>
    %38 = vector.multi_reduction <add>, %37, %cst_8 [0] : vector<32x128xf32> to vector<128xf32>
    %39 = vector.shape_cast %38 : vector<128xf32> to vector<1x128xf32>
    %40 = tpu.concatenate %36, %39 in 0 : vector<1x128xf32>, vector<1x128xf32> -> vector<2x128xf32>
    %c0_9 = arith.constant 0 : index
    %c0_10 = arith.constant 0 : index
    %c0_11 = arith.constant 0 : index
    %41 = vector.load %arg4[%c0_9, %c0_10, %c0_11] : memref<1x2x128xf32, #tpu.memory_space<vmem>>, vector<1x2x128xf32>
    %42 = vector.shape_cast %41 : vector<1x2x128xf32> to vector<2x128xf32>
    %43 = vector.shape_cast %40 : vector<2x128xf32> to vector<1x2x128xf32>
    tpu.vector_store %arg4[%c0_9, %c0_10, %c0_11], %43 {strides = array<i32>} : memref<1x2x128xf32, #tpu.memory_space<vmem>>, vector<1x2x128xf32>,
    return
  }
  func.func @transform_0(%arg0: i32) -> (i32, i32, i32) {
    %c0_i32 = arith.constant 0 : i32
    %c0_i32_0 = arith.constant 0 : i32
    %c0_i32_1 = arith.constant 0 : i32
    return %arg0, %c0_i32, %c0_i32_0 : i32, i32, i32
  }
  func.func @transform_1(%arg0: i32) -> (i32, i32) {
    %c0_i32 = arith.constant 0 : i32
    %c0_i32_0 = arith.constant 0 : i32
    %c0_i32_1 = arith.constant 0 : i32
    return %c0_i32, %c0_i32_0 : i32, i32
  }
  func.func @transform_2(%arg0: i32) -> (i32, i32, i32) {
    %c0_i32 = arith.constant 0 : i32
    %c0_i32_0 = arith.constant 0 : i32
    %c0_i32_1 = arith.constant 0 : i32
    return %arg0, %c0_i32, %c0_i32_0 : i32, i32, i32
  }
  func.func @transform_3(%arg0: i32) -> (i32, i32, i32) {
    %c0_i32 = arith.constant 0 : i32
    %c0_i32_0 = arith.constant 0 : i32
    %c0_i32_1 = arith.constant 0 : i32
    return %arg0, %c0_i32, %c0_i32_0 : i32, i32, i32
  }
}

</mosaic_0001>

<bundles_post_ra>
// kernel: global_conv_forward.1
= control target key start
LH: loop header
LB: loop body
LE: loop exit
PB: predicated region body
PF: predicated region fallthrough
CT: control target
= control target key end

     0   :  { %vm211_vm0 = vcmask 523264   ;;  %vm389_vm1 = vcmask 1046528   ;;  %vm402_vm2 = vcmask 1045504   ;;  %vm415_vm3 = vcmask 1044480   ;;  %s1082_s1 = inlined_call_operand.vmem [shape: bf16[64,896], index: 1, kind: input, shape index: {}]   ;;  %s1083_s0 = inlined_call_operand.vmem [shape: bf16[1,44,64], index: 0, kind: input, shape index: {}]   ;;  %s1084_s2 = inlined_call_operand.vmem [shape: bf16[1,32,128], index: 2, kind: output, shape index: {0}]   ;;  %s1085_s3 = inlined_call_operand.vmem [shape: f32[1,2,128], index: 3, kind: output, shape index: {1}]  }
   0x1   :  { %v692_v0 = vld [vmem:[%s1082_s1 + $0xa8] sm:$0xf]  ;;  %v766_v1 = vld [vmem:[%s1082_s1 + $0xc0] sm:$0xf0]  ;;  %v763_v2 = vld [vmem:[%s1082_s1 + $0xac] sm:$0xf] }
   0x2   :  { %v693_v3 = vor.u32 %v766_v1, %v692_v0  ;;  %v694_v4 = vld [vmem:[%s1082_s1 + $0xc4] sm:$0xf0]  ;;  %v700_v5 = vld [vmem:[%s1082_s1 + $0xb0] sm:$0xf]  ;;  %v767_v6 = vld [vmem:[%s1082_s1 + $0xc8] sm:$0xf0] }
   0x3   :  { %v697_v7 = vor.u32 %v763_v2, %v694_v4  ;;  %v701_v8 = vor.u32 %v767_v6, %v700_v5  ;;  %v664_v9 = vld [vmem:[%s1082_s1 + $0x70] sm:$0xf]  ;;  %v759_v10 = vld [vmem:[%s1082_s1 + $0x88] sm:$0xf0]  ;;  %v756_v11 = vld [vmem:[%s1082_s1 + $0x74] sm:$0xf] }
   0x4   :  { %781 = vmatpush.bf16.msra.mxu3 %v693_v3  ;;  %v665_v12 = vor.u32 %v759_v10, %v664_v9  ;;  %v666_v13 = vld [vmem:[%s1082_s1 + $0x8c] sm:$0xf0]  ;;  %v672_v14 = vld [vmem:[%s1082_s1 + $0x78] sm:$0xf]  ;;  %v760_v15 = vld [vmem:[%s1082_s1 + $0x90] sm:$0xf0]  ;;  %225 = vmatpush.bf16.msra.mxu0 %v693_v3 }
   0x5   :  { %248 = vmatpush.bf16.msra.mxu1 %v697_v7  ;;  %271 = vmatpush.bf16.msra.mxu2 %v701_v8  ;;  %v669_v16 = vor.u32 %v756_v11, %v666_v13  ;;  %v673_v17 = vor.u32 %v760_v15, %v672_v14  ;;  %v636_v18 = vld [vmem:[%s1082_s1 + $0x38] sm:$0xf]  ;;  %v752_v19 = vld [vmem:[%s1082_s1 + $0x50] sm:$0xf0]  ;;  %v749_v20 = vld [vmem:[%s1082_s1 + $0x3c] sm:$0xf] }
   0x6   :  { %v638_v21 = vld [vmem:[%s1082_s1 + $0x54] sm:$0xf0]  ;;  %v644_v22 = vld [vmem:[%s1082_s1 + $0x40] sm:$0xf]  ;;  %v753_v23 = vld [vmem:[%s1082_s1 + $0x58] sm:$0xf0]  ;;  %v637_v24 = vor.u32 %v752_v19, %v636_v18 }
   0x7   :  { %v608_v25 = vld [vmem:[%s1082_s1] sm:$0xf]  ;;  %v641_v26 = vor.u32 %v749_v20, %v638_v21  ;;  %v645_v27 = vor.u32 %v753_v23, %v644_v22  ;;  %v745_v28 = vld [vmem:[%s1082_s1 + $0x18] sm:$0xf0]  ;;  %v742_v29 = vld [vmem:[%s1082_s1 + $0x4] sm:$0xf] }
   0x8   :  { %782 = vmatpush.bf16.msra.mxu3 %v665_v12  ;;  %226 = vmatpush.bf16.msra.mxu0 %v665_v12  ;;  %v610_v30 = vld [vmem:[%s1082_s1 + $0x1c] sm:$0xf0]  ;;  %v616_v31 = vld [vmem:[%s1082_s1 + $0x8] sm:$0xf]  ;;  %v746_v32 = vld [vmem:[%s1082_s1 + $0x20] sm:$0xf0]  ;;  %v609_v37 = vor.u32 %v745_v28, %v608_v25 }
   0x9   :  { %249 = vmatpush.bf16.msra.mxu1 %v669_v16  ;;  %272 = vmatpush.bf16.msra.mxu2 %v673_v17  ;;  %v716_v33 = vld [vmem:[%s1082_s1 + $0xc0] sm:$0xf]  ;;  %v769_v34 = vld [vmem:[%s1082_s1 + $0xd8] sm:$0xf0]  ;;  %v710_v36 = vld [vmem:[%s1082_s1 + $0xd4] sm:$0xf0]  ;;  %v613_v38 = vor.u32 %v742_v29, %v610_v30  ;;  %v617_v39 = vor.u32 %v746_v32, %v616_v31 }
   0xa   :  { %v765_v35 = vld [vmem:[%s1082_s1 + $0xbc] sm:$0xf]  ;;  %v892_v40 = vld [vmem:[%s1083_s0 + $0x8] sm:$0xff]  ;;  %v764_v41 = vld [vmem:[%s1082_s1 + $0xb4] sm:$0xf]  ;;  %v717_v43 = vor.u32 %v769_v34, %v716_v33  ;;  %vm428_vm4 = vcmask 1043456  }
   0xb   :  { %v702_v42 = vld [vmem:[%s1082_s1 + $0xcc] sm:$0xf0]  ;;  %v713_v44 = vor.u32 %v765_v35, %v710_v36  ;;  %v688_v45 = vld [vmem:[%s1082_s1 + $0x88] sm:$0xf]  ;;  %v708_v46 = vld [vmem:[%s1082_s1 + $0xb8] sm:$0xf] }
   0xc   :  { %783 = vmatpush.bf16.msra.mxu3 %v637_v24  ;;  %227 = vmatpush.bf16.msra.mxu0 %v637_v24  ;;  %v768_v47 = vld [vmem:[%s1082_s1 + $0xd0] sm:$0xf0]  ;;  %v762_v48 = vld [vmem:[%s1082_s1 + $0xa0] sm:$0xf0]  ;;  %v682_v50 = vld [vmem:[%s1082_s1 + $0x9c] sm:$0xf0]  ;;  %v705_v52 = vor.u32 %v764_v41, %v702_v42 }
   0xd   :  { %250 = vmatpush.bf16.msra.mxu1 %v641_v26  ;;  %273 = vmatpush.bf16.msra.mxu2 %v645_v27  ;;  %v758_v49 = vld [vmem:[%s1082_s1 + $0x84] sm:$0xf]  ;;  %v757_v53 = vld [vmem:[%s1082_s1 + $0x7c] sm:$0xf]  ;;  %v674_v54 = vld [vmem:[%s1082_s1 + $0x94] sm:$0xf0]  ;;  %v709_v55 = vor.u32 %v768_v47, %v708_v46  ;;  %v689_v56 = vor.u32 %v762_v48, %v688_v45 }
   0xe   :  { %v921_v51 = vld [vmem:[%s1083_s0] sm:$0xff]  ;;  %v685_v57 = vor.u32 %v758_v49, %v682_v50  ;;  %v761_v59 = vld [vmem:[%s1082_s1 + $0x98] sm:$0xf0]  ;;  %v660_v60 = vld [vmem:[%s1082_s1 + $0x50] sm:$0xf]  ;;  %v677_v0 = vor.u32 %v757_v53, %v674_v54  ;;  %vm441_vm5 = vcmask 1042432  }
   0xf   :  { %v680_v58 = vld [vmem:[%s1082_s1 + $0x80] sm:$0xf]  ;;  %v755_v61 = vld [vmem:[%s1082_s1 + $0x68] sm:$0xf0]  ;;  %v654_v63 = vld [vmem:[%s1082_s1 + $0x64] sm:$0xf0] }
  0x10   :  { %784 = vmatpush.bf16.msra.mxu3 %v609_v37  ;;  %228 = vmatpush.bf16.msra.mxu0 %v609_v37  ;;  %v751_v62 = vld [vmem:[%s1082_s1 + $0x4c] sm:$0xf]  ;;  %v681_v1 = vor.u32 %v761_v59, %v680_v58  ;;  %v750_v2 = vld [vmem:[%s1082_s1 + $0x44] sm:$0xf]  ;;  %v646_v3 = vld [vmem:[%s1082_s1 + $0x5c] sm:$0xf0]  ;;  %v661_v4 = vor.u32 %v755_v61, %v660_v60 }
  0x11   :  { %251 = vmatpush.bf16.msra.mxu1 %v613_v38  ;;  %274 = vmatpush.bf16.msra.mxu2 %v617_v39  ;;  %v652_v5 = vld [vmem:[%s1082_s1 + $0x48] sm:$0xf]  ;;  %v754_v6 = vld [vmem:[%s1082_s1 + $0x60] sm:$0xf0]  ;;  %v657_v7 = vor.u32 %v751_v62, %v654_v63  ;;  %v632_v8 = vld [vmem:[%s1082_s1 + $0x18] sm:$0xf]  ;;  %v649_v12 = vor.u32 %v750_v2, %v646_v3 }
  0x12   :  { %v748_v9 = vld [vmem:[%s1082_s1 + $0x30] sm:$0xf0]  ;;  %v626_v11 = vld [vmem:[%s1082_s1 + $0x2c] sm:$0xf0]  ;;  %v653_v13 = vor.u32 %v754_v6, %v652_v5  ;;  %v743_v14 = vld [vmem:[%s1082_s1 + $0xc] sm:$0xf] }
  0x13   :  { %719 = vmatmul.msk.bf16.vlgmr.msra.gmra.mxu3 %vm211_vm0, %v892_v40  ;;  %718 = vmatmul.msk.bf16.vlgmr.msra.gmra.mxu0 %vm211_vm0, %v921_v51  ;;  %v744_v10 = vld [vmem:[%s1082_s1 + $0x14] sm:$0xf]  ;;  %v618_v15 = vld [vmem:[%s1082_s1 + $0x24] sm:$0xf0]  ;;  %v624_v16 = vld [vmem:[%s1082_s1 + $0x10] sm:$0xf]  ;;  %v633_v18 = vor.u32 %v748_v9, %v632_v8 }
  0x14   :  { %721 = vmatmul.msk.bf16.vlgmr.msra.gmra.mxu1 %vm211_vm0, %v921_v51  ;;  %724 = vmatmul.msk.bf16.vlgmr.msra.gmra.mxu2 %vm211_vm0, %v921_v51  ;;  %v747_v17 = vld [vmem:[%s1082_s1 + $0x28] sm:$0xf0]  ;;  %v629_v19 = vor.u32 %v744_v10, %v626_v11  ;;  %v604_v20 = vld [vmem:[%s1083_s0 + $0x10] sm:$0xf]  ;;  %v741_v21 = vld [vmem:[%s1083_s0 + $0x10] sm:$0x30]  ;;  %v621_v22 = vor.u32 %v743_v14, %v618_v15 }
  0x15   :  { %366 = vmatpush.bf16.msrb.mxu2 %v717_v43  ;;  %342 = vmatpush.bf16.msrb.mxu1 %v713_v44  ;;  %v625_v23 = vor.u32 %v747_v17, %v624_v16  ;;  %v605_v24 = vor.u32 %v741_v21, %v604_v20  ;;  %vm454_vm6 = vcmask 1041408   ;;  %vm583_vm7 = vcmask 1040384  }
  0x16   :  { %294 = vmatpush.bf16.msrb.mxu3 %v705_v52  ;;  %318 = vmatpush.bf16.msrb.mxu0 %v709_v55 }
  0x19   :  { %367 = vmatpush.bf16.msrb.mxu2 %v689_v56  ;;  %343 = vmatpush.bf16.msrb.mxu1 %v685_v57 }
  0x1a   :  { %295 = vmatpush.bf16.msrb.mxu3 %v677_v0  ;;  %319 = vmatpush.bf16.msrb.mxu0 %v681_v1 }
  0x1d   :  { %368 = vmatpush.bf16.msrb.mxu2 %v661_v4  ;;  %344 = vmatpush.bf16.msrb.mxu1 %v657_v7 }
  0x1e   :  { %296 = vmatpush.bf16.msrb.mxu3 %v649_v12  ;;  %320 = vmatpush.bf16.msrb.mxu0 %v653_v13 }
  0x21   :  { %369 = vmatpush.bf16.msrb.mxu2 %v633_v18  ;;  %345 = vmatpush.bf16.msrb.mxu1 %v629_v19 }
  0x22   :  { %297 = vmatpush.bf16.msrb.mxu3 %v621_v22  ;;  %321 = vmatpush.bf16.msrb.mxu0 %v625_v23 }
  0x23   :  { %720 = vmatmul.msk.bf16.gmra.mxu3 %vm211_vm0, %v605_v24 }
  0x24   :  { %722 = vmatmul.msk.bf16.gmra.mxu1 %vm211_vm0, %v892_v40  ;;  %725 = vmatmul.msk.bf16.gmra.mxu2 %vm211_vm0, %v892_v40 }
  0x25   :  { %730 = vmatmul.msk.bf16.vlgmr.msrb.gmra.mxu0 %vm211_vm0, %v921_v51 }
  0x33   :  { %727 = vmatmul.msk.bf16.vlgmr.msrb.gmra.mxu3 %vm211_vm0, %v921_v51 }
  0x34   :  { %723 = vmatmul.msk.bf16.gmra.mxu1 %vm211_vm0, %v605_v24  ;;  %726 = vmatmul.msk.bf16.gmra.mxu2 %vm211_vm0, %v605_v24 }
  0x35   :  { %731 = vmatmul.msk.bf16.gmra.mxu0 %vm211_vm0, %v892_v40 }
  0x43   :  { %728 = vmatmul.msk.bf16.gmra.mxu3 %vm211_vm0, %v892_v40 }
  0x44   :  { %733 = vmatmul.msk.bf16.vlgmr.msrb.gmra.mxu1 %vm211_vm0, %v921_v51  ;;  %736 = vmatmul.msk.bf16.vlgmr.msrb.gmra.mxu2 %vm211_vm0, %v921_v51 }
  0x45   :  { %732 = vmatmul.msk.bf16.gmra.mxu0 %vm211_vm0, %v605_v24 }
  0x53   :  { %729 = vmatmul.msk.bf16.gmra.mxu3 %vm211_vm0, %v605_v24 }
  0x54   :  { %734 = vmatmul.msk.bf16.gmra.mxu1 %vm211_vm0, %v892_v40  ;;  %737 = vmatmul.msk.bf16.gmra.mxu2 %vm211_vm0, %v892_v40 }
  0x64   :  { %735 = vmatmul.msk.bf16.gmra.mxu1 %vm211_vm0, %v605_v24  ;;  %738 = vmatmul.msk.bf16.gmra.mxu2 %vm211_vm0, %v605_v24 }
  0x90   :  { %v230_v32 = vpop.f32.mrf.mxu0 }
  0x91   :  { %v253_v25 = vpop.f32.mrf.mxu1 }
  0x92   :  { %v390_v52 = vrot.slane %v253_v25, 1 }
  0x96   :  { %v1024_v26 = vpop.f32.mrf.mxu3 }
  0x97   :  { %v276_v27 = vpop.f32.mrf.mxu2 }
  0x98   :  { %v232_v36 = vpop.f32.mrf.mxu0  ;;  %v403_v57 = vrot.slane %v276_v27, 2 }
  0x99   :  { %v255_v28 = vpop.f32.mrf.mxu1 }
  0x9a   :  { %v391_v49 = vrot.slane %v255_v28, 1 }
  0x9c   :  { %v392_v58 = vsel %vm389_vm1, %v390_v52, %v391_v49 }
  0x9d   :  { %v397_v2 = vadd.f32 %v392_v58, %v230_v32 }
  0x9e   :  { %v1026_v29 = vpop.f32.mrf.mxu3 }
  0x9f   :  { %v278_v30 = vpop.f32.mrf.mxu2 }
  0xa0   :  { %v404_v55 = vrot.slane %v278_v30, 2 }
  0xa1   :  { %v1028_v31 = vpop.f32.mrf.mxu1 }
  0xa2   :  { %v323_v40 = vpop.f32.mrf.mxu0  ;;  %v393_v51 = vrot.slane %v1028_v31, 1  ;;  %v405_v63 = vsel %vm402_vm2, %v403_v57, %v404_v55 }
  0xa3   :  { %v429_v5 = vrot.slane %v323_v40, 4  ;;  %v410_v9 = vadd.f32 %v405_v63, %v397_v2 }
  0xa4   :  { %v394_v59 = vsel %vm389_vm1, %v391_v49, %v393_v51 }
  0xa5   :  { %v398_v3 = vadd.f32 %v394_v59, %v232_v36 }
  0xa6   :  { %v1030_v33 = vpop.f32.mrf.mxu3 }
  0xa7   :  { %v281_v34 = vpop.f32.mrf.mxu2 }
  0xa8   :  { %v406_v56 = vrot.slane %v281_v34, 2 }
  0xa9   :  { %v1032_v35 = vpop.f32.mrf.mxu1 }
  0xaa   :  { %v325_v45 = vpop.f32.mrf.mxu0  ;;  %v407_v0 = vsel %vm402_vm2, %v404_v55, %v406_v56  ;;  %v466_v21 = vrot.slane %v1032_v35, 1 }
  0xab   :  { %v430_v6 = vrot.slane %v325_v45, 4  ;;  %v411_v10 = vadd.f32 %v407_v0, %v398_v3 }
  0xad   :  { %v431_v18 = vsel %vm428_vm4, %v429_v5, %v430_v6 }
  0xae   :  { %v242_v37 = vpop.f32.mrf.mxu3 }
  0xaf   :  { %v1034_v38 = vpop.f32.mrf.mxu2 }
  0xb0   :  { %v478_v45 = vrot.slane %v1034_v38, 2 }
  0xb1   :  { %v1036_v39 = vpop.f32.mrf.mxu1 }
  0xb2   :  { %v328_v53 = vpop.f32.mrf.mxu0  ;;  %v468_v32 = vrot.slane %v1036_v39, 1 }
  0xb3   :  { %v432_v12 = vrot.slane %v328_v53, 4 }
  0xb4   :  { %v475_v5 = vadd.f32 %v468_v32, %v1030_v33 }
  0xb5   :  { %v433_v22 = vsel %vm428_vm4, %v430_v6, %v432_v12 }
  0xb6   :  { %v299_v41 = vpop.f32.mrf.mxu3 }
  0xb7   :  { %v1038_v42 = vpop.f32.mrf.mxu2  ;;  %v416_v60 = vrot.slane %v299_v41, 3  ;;  %v467_v41 = vsel %vm389_vm1, %v393_v51, %v466_v21 }
  0xb8   :  { %v473_v39 = vadd.f32 %v467_v41, %v1024_v26 }
  0xb9   :  { %v265_v43 = vpop.f32.mrf.mxu1 }
  0xba   :  { %v330_v17 = vpop.f32.mrf.mxu0  ;;  %v479_v43 = vrot.slane %v1038_v42, 2  ;;  %v484_v55 = vadd.f32 %v478_v45, %v473_v39 }
  0xbb   :  { %v504_v57 = vrot.slane %v330_v17, 4 }
  0xbc   :  { %v486_v12 = vadd.f32 %v479_v43, %v475_v5 }
  0xbe   :  { %v301_v44 = vpop.f32.mrf.mxu3 }
  0xbf   :  { %v288_v46 = vpop.f32.mrf.mxu2  ;;  %v417_v61 = vrot.slane %v301_v44, 3 }
  0xc1   :  { %v347_v47 = vpop.f32.mrf.mxu1  ;;  %v418_v7 = vsel %vm415_vm3, %v416_v60, %v417_v61 }
  0xc2   :  { %v423_v15 = vadd.f32 %v418_v7, %v410_v9  ;;  %v442_v19 = vrot.slane %v347_v47, 5  ;;  %v333_v52 = vpop.f32.mrf.mxu0 }
  0xc3   :  { %v505_v60 = vrot.slane %v333_v52, 4 }
  0xc4   :  { %v436_v27 = vadd.f32 %v431_v18, %v423_v15 }
  0xc5   :  { %v506_v3 = vsel %vm428_vm4, %v504_v57, %v505_v60 }
  0xc6   :  { %v304_v48 = vpop.f32.mrf.mxu3 }
  0xc7   :  { %v371_v50 = vpop.f32.mrf.mxu2  ;;  %v419_v62 = vrot.slane %v304_v48, 3  ;;  %v469_v48 = vsel %vm389_vm1, %v466_v21, %v468_v32 }
  0xc8   :  { %v455_v23 = vrot.slane %v371_v50, 6  ;;  %v474_v51 = vadd.f32 %v469_v48, %v1026_v29 }
  0xc9   :  { %v349_v54 = vpop.f32.mrf.mxu1  ;;  %v420_v8 = vsel %vm415_vm3, %v417_v61, %v419_v62 }
  0xca   :  { %v443_v13 = vrot.slane %v349_v54, 5  ;;  %v424_v16 = vadd.f32 %v420_v8, %v411_v10  ;;  %v480_v54 = vsel %vm402_vm2, %v478_v45, %v479_v43  ;;  %v335_v29 = vpop.f32.mrf.mxu0 }
  0xcb   :  { %v485_v56 = vadd.f32 %v480_v54, %v474_v51  ;;  %v507_v10 = vrot.slane %v335_v29, 4 }
  0xcc   :  { %v444_v24 = vsel %vm441_vm5, %v442_v19, %v443_v13  ;;  %v437_v28 = vadd.f32 %v433_v22, %v424_v16 }
  0xcd   :  { %v449_v37 = vadd.f32 %v444_v24, %v436_v27 }
  0xce   :  { %v306_v1 = vpop.f32.mrf.mxu3 }
  0xcf   :  { %v373_v4 = vpop.f32.mrf.mxu2  ;;  %v490_v50 = vrot.slane %v306_v1, 3 }
  0xd0   :  { %v456_v20 = vrot.slane %v373_v4, 6 }
  0xd1   :  { %v352_v11 = vpop.f32.mrf.mxu1  ;;  %v498_v58 = vadd.f32 %v490_v50, %v484_v55 }
  0xd2   :  { %v445_v14 = vrot.slane %v352_v11, 5  ;;  %v457_v34 = vsel %vm454_vm6, %v455_v23, %v456_v20 }
  0xd3   :  { %v462_v46 = vadd.f32 %v457_v34, %v449_v37  ;;  %v512_v1 = vadd.f32 %v504_v57, %v498_v58 }
  0xd4   :  { %v446_v25 = vsel %vm441_vm5, %v443_v13, %v445_v14 }
  0xd5   :  { %v450_v40 = vadd.f32 %v446_v25, %v437_v28  ;;  %v570_v34 = vmul.f32 %v462_v46, %v462_v46 }
  0xd6   :  { %v309_v30 = vpop.f32.mrf.mxu3 }
  0xd7   :  { %v376_v31 = vpop.f32.mrf.mxu2  ;;  %v491_v49 = vrot.slane %v309_v30, 3 }
  0xd8   :  { %v458_v36 = vrot.slane %v376_v31, 6 }
  0xd9   :  { %v354_v35 = vpop.f32.mrf.mxu1  ;;  %v492_v42 = vsel %vm415_vm3, %v490_v50, %v491_v49 }
  0xda   :  { %v459_v44 = vsel %vm454_vm6, %v456_v20, %v458_v36  ;;  %v499_v62 = vadd.f32 %v492_v42, %v485_v56  ;;  %v518_v63 = vrot.slane %v354_v35, 5  ;;  %v508_v20 = vsel %vm428_vm4, %v505_v60, %v507_v10 }
  0xdb   :  { %v463_v47 = vadd.f32 %v459_v44, %v450_v40 }
  0xdc   :  { %v526_v6 = vadd.f32 %v518_v63, %v512_v1  ;;  %v513_v7 = vadd.f32 %v506_v3, %v499_v62 }
  0xdd   :  { %v773_v53 = vpack.c.bf16 %v463_v47, %v462_v46  ;;  %v571_v30 = vmul.f32 %v463_v47, %v463_v47  ;;  %v561_v36 = vadd.f32 %v463_v47, %v462_v46 }
  0xde   :  { %v311_v59 = vpop.f32.mrf.mxu3 }
  0xdf   :  { %774 = vst [vmem:[%s1084_s2] sm:$0xff] %v773_v53   ;;  %v378_v38 = vpop.f32.mrf.mxu2  ;;  %v493_v0 = vrot.slane %v311_v59, 3  ;;  %v574_v35 = vadd.f32 %v571_v30, %v570_v34 }
  0xe0   :  { %v532_v2 = vrot.slane %v378_v38, 6 }
  0xe1   :  { %v357_v26 = vpop.f32.mrf.mxu1  ;;  %v494_v9 = vsel %vm415_vm3, %v491_v49, %v493_v0 }
  0xe2   :  { %v519_v61 = vrot.slane %v357_v26, 5  ;;  %v540_v13 = vadd.f32 %v532_v2, %v526_v6  ;;  %v500_v18 = vadd.f32 %v494_v9, %v486_v12 }
  0xe4   :  { %v520_v4 = vsel %vm441_vm5, %v518_v63, %v519_v61  ;;  %v546_v21 = vrot.slane %v540_v13, 6  ;;  %v514_v23 = vadd.f32 %v508_v20, %v500_v18 }
  0xe5   :  { %v527_v14 = vadd.f32 %v520_v4, %v513_v7 }
  0xe7   :  { %v381_v8 = vpop.f32.mrf.mxu2 }
  0xe8   :  { %v533_v11 = vrot.slane %v381_v8, 6 }
  0xe9   :  { %v359_v15 = vpop.f32.mrf.mxu1 }
  0xea   :  { %v534_v16 = vsel %vm454_vm6, %v532_v2, %v533_v11  ;;  %v521_v17 = vrot.slane %v359_v15, 5 }
  0xeb   :  { %v541_v19 = vadd.f32 %v534_v16, %v527_v14 }
  0xec   :  { %v522_v22 = vsel %vm441_vm5, %v519_v61, %v521_v17 }
  0xed   :  { %v547_v33 = vrot.slane %v541_v19, 6  ;;  %v528_v28 = vadd.f32 %v522_v22, %v514_v23 }
  0xef   :  { %v548_v24 = vsel %vm454_vm6, %v546_v21, %v547_v33  ;;  %v383_v25 = vpop.f32.mrf.mxu2 }
  0xf0   :  { %v535_v27 = vrot.slane %v383_v25, 6  ;;  %v572_v37 = vmul.f32 %v548_v24, %v548_v24  ;;  %v562_v41 = vadd.f32 %v561_v36, %v548_v24 }
  0xf2   :  { %v536_v31 = vsel %vm454_vm6, %v533_v11, %v535_v27  ;;  %v575_v44 = vadd.f32 %v574_v35, %v572_v37 }
  0xf3   :  { %v542_v32 = vadd.f32 %v536_v31, %v528_v28 }
  0xf5   :  { %v549_v40 = vrot.slane %v542_v32, 6 }
  0xf7   :  { %v550_v43 = vsel %vm454_vm6, %v547_v33, %v549_v40 }
  0xf8   :  { %v778_v45 = vpack.c.bf16 %v550_v43, %v548_v24  ;;  %v563_v48 = vadd.f32 %v562_v41, %v550_v43  ;;  %v573_v49 = vmul.f32 %v550_v43, %v550_v43 }
  0xfa   :  { %780 = vst [vmem:[%s1084_s2 + $0x8] sm:$0xff] %v778_v45   ;;  %v564_v39 = vrot.slane %v563_v48, 4  ;;  %v576_v50 = vadd.f32 %v575_v44, %v573_v49 }
  0xfc   :  { %v565_v52 = vadd.f32 %v564_v39, %v563_v48  ;;  %v577_v53 = vrot.slane %v576_v50, 4 }
  0xfe   :  { %v566_v54 = vrot.slane %v565_v52, 2  ;;  %v578_v46 = vadd.f32 %v577_v53, %v576_v50 }
 0x100   :  { %v567_v47 = vadd.f32 %v566_v54, %v565_v52  ;;  %v579_v55 = vrot.slane %v578_v46, 2 }
 0x102   :  { %v568_v51 = vrot.slane %v567_v47, 1  ;;  %v580_v38 = vadd.f32 %v579_v55, %v578_v46 }
 0x104   :  { %v581_v42 = vrot.slane %v580_v38, 1  ;;  %v569_v56 = vadd.f32 %v568_v51, %v567_v47 }
 0x106   :  { %v582_v57 = vadd.f32 %v581_v42, %v580_v38 }
 0x108   :  { %v584_v58 = vsel %vm583_vm7, %v569_v56, %v582_v57 }
 0x109   :  { %585 = vst [vmem:[%s1085_s3] sm:$0x3] %v584_v58 }

</bundles_post_ra>
